<compile_context>
chip_gen: v6e
topology: v6e:2x2x1
jax: 0.10.0
libtpu: 0.0.40
codegen_flags: <defaults>
</compile_context>

<pallas_src>
import functools

import jax
import jax.numpy as jnp
from jax.experimental import pallas as pl
from jax.experimental.pallas import tpu as pltpu


_VMEM_BUDGET_BYTES = 10 * 1024 * 1024   # conservative across v5e/v6e/v7x scoped defaults


# ----------------------------- Pallas kernels -----------------------------

def _gmm_pool_batch_kernel(x_ref, wall_ref, ball_ref, w2j_ref, b2_ref,
                           re_ref, cls_ref, *, out1):
    """Batch-tiled path: grid=(B//Bt,), one step handles Bt whole sequences.

    x_ref    : (Bt, L, H)      input activations (bf16)
    wall_ref : (H, out1 + 4)   [re_fc | fc1] fused weight (bf16)
    ball_ref : (1, out1 + 4)   fused bias (f32)
    w2j_ref  : (4, L, C)       fc2 weight, w2j[j, l, c] == W2[l*4 + j, c] (f32, resident)
    b2_ref   : (1, C)          fc2 bias (f32)
    re_ref   : (Bt, L, out1)   re_sketch output tile (bf16)
    cls_ref  : (Bt, 1, C)      pooled/cls output (f32)
    """
    bt, seq, hid = x_ref.shape
    # Single wide MXU matmul, f32 accumulation.  The reshape is free because the
    # wrapper only allows bt > 1 when L % 8 == 0 (tile-aligned sublane split).
    x2 = x_ref[...].reshape(bt * seq, hid)
    fused = jnp.dot(x2, wall_ref[...],
                    preferred_element_type=jnp.float32) + ball_ref[...]

    # re_sketch half (lane-prefix slice), stored as bf16.
    re_ref[...] = fused[:, :out1].reshape(bt, seq, out1).astype(re_ref.dtype)

    # fc1 half (Bt, L, 4) in f32 -> contract against fc2 weight on the VPU so the
    # intermediate never makes an HBM round trip.
    p = fused[:, out1:].reshape(bt, seq, 4)
    g = p[:, :, 0:1] * w2j_ref[0][None]
    for j in range(1, 4):                                     # tiny static loop
        g = g + p[:, :, j:j + 1] * w2j_ref[j][None]
    cls_ref[...] = (jnp.sum(g, axis=1, keepdims=True)
                    + b2_ref[...][None]).astype(cls_ref.dtype)


def _gmm_pool_ltiled_kernel(x_ref, wall_ref, ball_ref, w2j_ref, b2_ref,
                            re_ref, cls_ref, acc_ref, *, out1, l_tile):
    """L-tiled fallback path: grid=(B, L//lt), fc2 accumulated across L tiles.

    w2j_ref is the FULL (4, L, C) weight (constant index_map -> fetched once per
    call); the current L tile is sliced out of VMEM in-kernel.
    acc_ref  : (lt, C) f32 scratch; the cross-sublane reduce is deferred to the
               li == last epilogue.
    """
    li = pl.program_id(1)

    @pl.when(li == 0)
    def _init():
        acc_ref[...] = jnp.zeros_like(acc_ref)

    x = x_ref[0]                                              # (lt, H)
    fused = jnp.dot(x, wall_ref[...],
                    preferred_element_type=jnp.float32) + ball_ref[...]
    re_ref[0] = fused[:, :out1].astype(re_ref.dtype)

    p = fused[:, out1:]                                       # (lt, 4) f32
    start = pl.multiple_of(li * l_tile, l_tile)
    g = p[:, 0:1] * w2j_ref[0, pl.ds(start, l_tile), :]
    for j in range(1, 4):
        g = g + p[:, j:j + 1] * w2j_ref[j, pl.ds(start, l_tile), :]
    acc_ref[...] += g                                         # pure VPU per step

    @pl.when(li == pl.num_programs(1) - 1)
    def _finalize():
        cls_ref[0] = (jnp.sum(acc_ref[...], axis=0, keepdims=True)
                      + b2_ref[...]).astype(cls_ref.dtype)


# ----------------------------- plan / wrapper -----------------------------

def _choose_plan(B, L, H, out1, C, cb, rb, force_l_tiled, l_tile, budget):
    """Pick ("batch", Bt) or ("ltiled", lt) under a conservative VMEM budget."""
    n_all = out1 + 4
    # Constant residents (double-buffer-counted): fused W/b, fc2 b, full fc2 W.
    const_bytes = 2 * (H * n_all * cb + n_all * 4 + C * 4) + 2 * 4 * L * C * 4
    avail = max(budget - const_bytes, 0)

    def batch_step_bytes(bt):
        io = 2 * bt * L * H * cb + 2 * bt * L * out1 * rb + 2 * bt * C * 4
        tmp = bt * L * n_all * 4 + 2 * bt * L * C * 4          # fused + g temporaries
        return io + tmp

    if not force_l_tiled and batch_step_bytes(1) <= avail:
        # Keep >= 2 parallel steps when B >= 2 so both TCs get work (v7x megacore).
        bt_cap = B if B == 1 else B // 2
        bt = 1
        for cand in range(1, bt_cap + 1):
            if B % cand:
                continue
            if cand > 1 and L % 8 != 0:      # in-kernel reshape must stay tile-aligned
                continue
            if batch_step_bytes(cand) <= avail:
                bt = cand
        return ("batch", bt)

    if l_tile is not None:
        return ("ltiled", l_tile)

    def ltile_step_bytes(lt):
        io = 2 * lt * H * cb + 2 * lt * out1 * rb
        tmp = lt * n_all * 4 + 2 * lt * C * 4 + lt * C * 4      # fused, g/slice, acc
        return io + tmp

    best = None
    for t in range(8, min(512, L) + 1, 8):
        if L % t == 0 and ltile_step_bytes(t) <= avail:
            best = t
    # TODO(synk): add a cdiv + masked-tail path for huge L with no multiple-of-8 divisor.
    return ("ltiled", best if best is not None else L)


def sketch_gmm_pooling_forward(hidden_states, params, *,
                               compute_dtype=jnp.bfloat16,
                               re_dtype=jnp.bfloat16,
                               force_l_tiled=False, l_tile=None,
                               vmem_budget_bytes=_VMEM_BUDGET_BYTES):
    """hidden_states: (B, L, H) f32.
    Returns (re_sketch (B, L, 6M+3) [re_dtype], pooled (B, cls_dim) f32)."""
    B, L, H = hidden_states.shape
    w_all = params["w_all"]            # (H, out1 + 4)
    b_all = params["b_all"]            # (1, out1 + 4) f32
    w2j = params["w2j"]                # (4, L, C)      f32
    b2 = params["b2"]                  # (1, C)         f32
    out1 = w_all.shape[1] - 4
    C = w2j.shape[2]
    assert w2j.shape == (4, L, C), (w2j.shape, L)

    cb = jnp.dtype(compute_dtype).itemsize
    rb = jnp.dtype(re_dtype).itemsize
    x = hidden_states.astype(compute_dtype)
    w_all_c = w_all.astype(compute_dtype)

    mode, tile = _choose_plan(B, L, H, out1, C, cb, rb,
                              force_l_tiled, l_tile, vmem_budget_bytes)

    if mode == "batch":
        bt = tile
        assert B % bt == 0 and (bt == 1 or L % 8 == 0), (B, bt, L)
        kernel = functools.partial(_gmm_pool_batch_kernel, out1=out1)
        re_sketch, cls3 = pl.pallas_call(
            kernel,
            out_shape=(
                jax.ShapeDtypeStruct((B, L, out1), re_dtype),
                jax.ShapeDtypeStruct((B, 1, C), jnp.float32),
            ),
            grid=(B // bt,),
            in_specs=[
                pl.BlockSpec((bt, L, H), lambda b: (b, 0, 0)),        # x
                pl.BlockSpec((H, out1 + 4), lambda b: (0, 0)),        # fused W
                pl.BlockSpec((1, out1 + 4), lambda b: (0, 0)),        # fused b
                pl.BlockSpec((4, L, C), lambda b: (0, 0, 0)),         # fc2 W (resident)
                pl.BlockSpec((1, C), lambda b: (0, 0)),               # fc2 b
            ],
            out_specs=(
                pl.BlockSpec((bt, L, out1), lambda b: (b, 0, 0)),     # re_sketch
                pl.BlockSpec((bt, 1, C), lambda b: (b, 0, 0)),        # cls
            ),
            compiler_params=pltpu.CompilerParams(
                dimension_semantics=("parallel",)),
        )(x, w_all_c, b_all, w2j, b2)
        return re_sketch, cls3[:, 0, :]

    lt = tile
    assert L % lt == 0 and (lt % 8 == 0 or lt == L), (L, lt)
    n_l = L // lt
    kernel = functools.partial(_gmm_pool_ltiled_kernel, out1=out1, l_tile=lt)
    re_sketch, cls3 = pl.pallas_call(
        kernel,
        out_shape=(
            jax.ShapeDtypeStruct((B, L, out1), re_dtype),
            jax.ShapeDtypeStruct((B, 1, C), jnp.float32),
        ),
        grid=(B, n_l),
        in_specs=[
            pl.BlockSpec((1, lt, H), lambda b, l: (b, l, 0)),         # x
            pl.BlockSpec((H, out1 + 4), lambda b, l: (0, 0)),         # fused W
            pl.BlockSpec((1, out1 + 4), lambda b, l: (0, 0)),         # fused b
            pl.BlockSpec((4, L, C), lambda b, l: (0, 0, 0)),          # fc2 W (resident, 1 fetch)
            pl.BlockSpec((1, C), lambda b, l: (0, 0)),                # fc2 b
        ],
        out_specs=(
            pl.BlockSpec((1, lt, out1), lambda b, l: (b, l, 0)),      # re_sketch
            pl.BlockSpec((1, 1, C), lambda b, l: (b, 0, 0)),          # cls (resident over l)
        ),
        scratch_shapes=[pltpu.VMEM((lt, C), jnp.float32)],
        compiler_params=pltpu.CompilerParams(
            dimension_semantics=("parallel", "arbitrary")),
    )(x, w_all_c, b_all, w2j, b2)
    return re_sketch, cls3[:, 0, :]


# ----------------------------- parameters -----------------------------

def init_raw_params(key, hidden_dim, M, cls_dim, max_length, scale=0.05):
    """Plain (in, out)-layout Linear params mirroring the PyTorch module."""
    out1 = 6 * M + 3
    k = jax.random.split(key, 6)
    return dict(
        re_w=scale * jax.random.normal(k[0], (hidden_dim, out1), jnp.float32),
        re_b=scale * jax.random.normal(k[1], (out1,), jnp.float32),
        fc1_w=scale * jax.random.normal(k[2], (hidden_dim, 4), jnp.float32),
        fc1_b=scale * jax.random.normal(k[3], (4,), jnp.float32),
        fc2_w=scale * jax.random.normal(k[4], (max_length * 4, cls_dim), jnp.float32),
        fc2_b=scale * jax.random.normal(k[5], (cls_dim,), jnp.float32),
    )


def prepare_params(raw, max_length):
    """One-time packing: concat [re_fc | fc1] weights and re-lay fc2 so that
    w2j[j, l, c] == fc2_w[l*4 + j, c] (matches pooled.view(B, L*4) flattening)."""
    H, out1 = raw["re_w"].shape
    C = raw["fc2_w"].shape[1]
    assert raw["fc2_w"].shape[0] == 4 * max_length
    w_all = jnp.concatenate([raw["re_w"], raw["fc1_w"]], axis=1)     # (H, out1+4)
    b_all = jnp.concatenate([raw["re_b"], raw["fc1_b"]])[None, :]    # (1, out1+4)
    w2j = raw["fc2_w"].reshape(max_length, 4, C).transpose(1, 0, 2)  # (4, L, C)
    return {
        "w_all": w_all.astype(jnp.float32),
        "b_all": b_all.astype(jnp.float32),
        "w2j": w2j.astype(jnp.float32),
        "b2": raw["fc2_b"][None, :].astype(jnp.float32),
    }


# ----------------------------- reference (plain JAX) -----------------------------

def reference_forward(hidden_states, raw):
    B = hidden_states.shape[0]
    re_sketch = hidden_states @ raw["re_w"] + raw["re_b"]
    pooled = hidden_states @ raw["fc1_w"] + raw["fc1_b"]
    pooled = pooled.reshape(B, -1) @ raw["fc2_w"] + raw["fc2_b"]
    return re_sketch, pooled


# ----------------------------- demo -----------------------------

if __name__ == "__main__":
    key = jax.random.PRNGKey(0)
    B = 2            # batch
    L = 128          # seq_len == max_length (required by pooled.view(B, L*4))
    H = 32           # hidden_dim
    M = 4            # GMM components -> re_fc out = 6*M + 3 = 27
    cls_dim = 16

    k_x, k_p = jax.random.split(key)
    hidden_states = jax.random.normal(k_x, (B, L, H), jnp.float32)
    raw = init_raw_params(k_p, H, M, cls_dim, L)
    params = prepare_params(raw, L)

    # Path 1 (default): batch-tiled single-matmul-per-step kernel, grid=(2,).
    re1, cls1 = sketch_gmm_pooling_forward(hidden_states, params)
    # Path 2: L-tiled accumulator fallback, forced small tile to exercise the
    # cross-tile fc2 accumulator + resident-w2j slicing (grid=(2, 2)).
    re2, cls2 = sketch_gmm_pooling_forward(hidden_states, params,
                                           force_l_tiled=True, l_tile=64)
    re1, cls1, re2, cls2 = jax.block_until_ready((re1, cls1, re2, cls2))

    re_ref, cls_ref = reference_forward(hidden_states, raw)
    for re_o, cls_o in ((re1, cls1), (re2, cls2)):
        assert re_o.shape == (B, L, 6 * M + 3), re_o.shape
        assert cls_o.shape == (B, cls_dim), cls_o.shape
        re_f32 = re_o.astype(jnp.float32)
        assert bool(jnp.all(jnp.isfinite(re_f32)))
        assert bool(jnp.all(jnp.isfinite(cls_o)))
        # bf16 MXU inputs + bf16 re_sketch output -> loose tolerance vs f32 reference.
        assert bool(jnp.allclose(re_f32, re_ref, rtol=5e-2, atol=5e-2)), \
            float(jnp.max(jnp.abs(re_f32 - re_ref)))
        assert bool(jnp.allclose(cls_o, cls_ref, rtol=5e-2, atol=5e-2)), \
            float(jnp.max(jnp.abs(cls_o - cls_ref)))

    print("KERNEL_OK")
</pallas_src>

<mosaic_0001>
module attributes {stable_mosaic.version = 11 : i64} {
  func.func @_gmm_pool_batch_kernel(%arg0: i32, %arg1: memref<1x128x32xbf16, #tpu.memory_space<vmem>>, %arg2: memref<32x31xbf16, #tpu.memory_space<vmem>>, %arg3: memref<1x31xf32, #tpu.memory_space<vmem>>, %arg4: memref<4x128x16xf32, #tpu.memory_space<vmem>>, %arg5: memref<1x16xf32, #tpu.memory_space<vmem>>, %arg6: memref<1x128x27xbf16, #tpu.memory_space<vmem>>, %arg7: memref<1x1x16xf32, #tpu.memory_space<vmem>>) attributes {dimension_semantics = [#tpu.dimension_semantics<parallel>], iteration_bounds = array<i64: 2>, scalar_prefetch = 0 : i64, scratch_operands = 0 : i64, tpu.core_type = #tpu.core_type<tc>, window_params = [{transform_indices = @transform_0, window_bounds = array<i64: 1, 128, 32>}, {pipeline_mode = #tpu.pipeline_mode<synchronous>, transform_indices = @transform_1, window_bounds = array<i64: 32, 31>}, {pipeline_mode = #tpu.pipeline_mode<synchronous>, transform_indices = @transform_2, window_bounds = array<i64: 1, 31>}, {pipeline_mode = #tpu.pipeline_mode<synchronous>, transform_indices = @transform_3, window_bounds = array<i64: 4, 128, 16>}, {pipeline_mode = #tpu.pipeline_mode<synchronous>, transform_indices = @transform_4, window_bounds = array<i64: 1, 16>}, {transform_indices = @transform_5, window_bounds = array<i64: 1, 128, 27>}, {transform_indices = @transform_6, window_bounds = array<i64: 1, 1, 16>}]} {
    %c0 = arith.constant 0 : index
    %c0_0 = arith.constant 0 : index
    %c0_1 = arith.constant 0 : index
    %0 = vector.load %arg1[%c0, %c0_0, %c0_1] : memref<1x128x32xbf16, #tpu.memory_space<vmem>>, vector<1x128x32xbf16>
    %1 = vector.shape_cast %0 : vector<1x128x32xbf16> to vector<128x32xbf16>
    %c0_2 = arith.constant 0 : index
    %c0_3 = arith.constant 0 : index
    %2 = vector.load %arg2[%c0_2, %c0_3] : memref<32x31xbf16, #tpu.memory_space<vmem>>, vector<32x31xbf16>
    %cst = arith.constant dense<0.000000e+00> : vector<128x31xf32>
    %3 = tpu.matmul %1, %2, %cst {dimension_numbers = #tpu.dot_dimension_numbers<[1], [0], [0], [1], [0, 0, 1, 1], [], []>} : vector<128x32xbf16>, vector<32x31xbf16>, vector<128x31xf32> -> vector<128x31xf32>
    %c0_4 = arith.constant 0 : index
    %c0_5 = arith.constant 0 : index
    %4 = vector.load %arg3[%c0_4, %c0_5] : memref<1x31xf32, #tpu.memory_space<vmem>>, vector<1x31xf32>
    %5 = vector.broadcast %4 : vector<1x31xf32> to vector<128x31xf32>
    %6 = arith.addf %3, %5 : vector<128x31xf32>
    %7 = vector.extract_strided_slice %6 {offsets = [0, 0], sizes = [128, 27], strides = [1, 1]} : vector<128x31xf32> to vector<128x27xf32>
    %8 = vector.shape_cast %7 : vector<128x27xf32> to vector<1x128x27xf32>
    %9 = arith.truncf %8 : vector<1x128x27xf32> to vector<1x128x27xbf16>
    %c0_6 = arith.constant 0 : index
    %c0_7 = arith.constant 0 : index
    %c0_8 = arith.constant 0 : index
    %10 = vector.load %arg6[%c0_6, %c0_7, %c0_8] : memref<1x128x27xbf16, #tpu.memory_space<vmem>>, vector<1x128x27xbf16>
    tpu.vector_store %arg6[%c0_6, %c0_7, %c0_8], %9 {strides = array<i32>} : memref<1x128x27xbf16, #tpu.memory_space<vmem>>, vector<1x128x27xbf16>,
    %11 = vector.extract_strided_slice %6 {offsets = [0, 27], sizes = [128, 4], strides = [1, 1]} : vector<128x31xf32> to vector<128x4xf32>
    %12 = vector.shape_cast %11 : vector<128x4xf32> to vector<1x128x4xf32>
    %13 = vector.extract_strided_slice %12 {offsets = [0, 0, 0], sizes = [1, 128, 1], strides = [1, 1, 1]} : vector<1x128x4xf32> to vector<1x128x1xf32>
    %c0_9 = arith.constant 0 : index
    %c0_10 = arith.constant 0 : index
    %c0_11 = arith.constant 0 : index
    %14 = vector.load %arg4[%c0_9, %c0_10, %c0_11] : memref<4x128x16xf32, #tpu.memory_space<vmem>>, vector<1x128x16xf32>
    %15 = vector.shape_cast %14 : vector<1x128x16xf32> to vector<128x16xf32>
    %16 = vector.shape_cast %15 : vector<128x16xf32> to vector<1x128x16xf32>
    %17 = vector.broadcast %13 : vector<1x128x1xf32> to vector<1x128x16xf32>
    %18 = arith.mulf %17, %16 : vector<1x128x16xf32>
    %19 = vector.extract_strided_slice %12 {offsets = [0, 0, 1], sizes = [1, 128, 1], strides = [1, 1, 1]} : vector<1x128x4xf32> to vector<1x128x1xf32>
    %c1 = arith.constant 1 : index
    %c0_12 = arith.constant 0 : index
    %c0_13 = arith.constant 0 : index
    %20 = vector.load %arg4[%c1, %c0_12, %c0_13] : memref<4x128x16xf32, #tpu.memory_space<vmem>>, vector<1x128x16xf32>
    %21 = vector.shape_cast %20 : vector<1x128x16xf32> to vector<128x16xf32>
    %22 = vector.shape_cast %21 : vector<128x16xf32> to vector<1x128x16xf32>
    %23 = vector.broadcast %19 : vector<1x128x1xf32> to vector<1x128x16xf32>
    %24 = arith.mulf %23, %22 : vector<1x128x16xf32>
    %25 = arith.addf %18, %24 : vector<1x128x16xf32>
    %26 = vector.extract_strided_slice %12 {offsets = [0, 0, 2], sizes = [1, 128, 1], strides = [1, 1, 1]} : vector<1x128x4xf32> to vector<1x128x1xf32>
    %c2 = arith.constant 2 : index
    %c0_14 = arith.constant 0 : index
    %c0_15 = arith.constant 0 : index
    %27 = vector.load %arg4[%c2, %c0_14, %c0_15] : memref<4x128x16xf32, #tpu.memory_space<vmem>>, vector<1x128x16xf32>
    %28 = vector.shape_cast %27 : vector<1x128x16xf32> to vector<128x16xf32>
    %29 = vector.shape_cast %28 : vector<128x16xf32> to vector<1x128x16xf32>
    %30 = vector.broadcast %26 : vector<1x128x1xf32> to vector<1x128x16xf32>
    %31 = arith.mulf %30, %29 : vector<1x128x16xf32>
    %32 = arith.addf %25, %31 : vector<1x128x16xf32>
    %33 = vector.extract_strided_slice %12 {offsets = [0, 0, 3], sizes = [1, 128, 1], strides = [1, 1, 1]} : vector<1x128x4xf32> to vector<1x128x1xf32>
    %c3 = arith.constant 3 : index
    %c0_16 = arith.constant 0 : index
    %c0_17 = arith.constant 0 : index
    %34 = vector.load %arg4[%c3, %c0_16, %c0_17] : memref<4x128x16xf32, #tpu.memory_space<vmem>>, vector<1x128x16xf32>
    %35 = vector.shape_cast %34 : vector<1x128x16xf32> to vector<128x16xf32>
    %36 = vector.shape_cast %35 : vector<128x16xf32> to vector<1x128x16xf32>
    %37 = vector.broadcast %33 : vector<1x128x1xf32> to vector<1x128x16xf32>
    %38 = arith.mulf %37, %36 : vector<1x128x16xf32>
    %39 = arith.addf %32, %38 : vector<1x128x16xf32>
    %cst_18 = arith.constant dense<0.000000e+00> : vector<1x16xf32>
    %40 = vector.multi_reduction <add>, %39, %cst_18 [1] : vector<1x128x16xf32> to vector<1x16xf32>
    %41 = vector.shape_cast %40 : vector<1x16xf32> to vector<1x1x16xf32>
    %c0_19 = arith.constant 0 : index
    %c0_20 = arith.constant 0 : index
    %42 = vector.load %arg5[%c0_19, %c0_20] : memref<1x16xf32, #tpu.memory_space<vmem>>, vector<1x16xf32>
    %43 = vector.shape_cast %42 : vector<1x16xf32> to vector<1x1x16xf32>
    %44 = arith.addf %41, %43 : vector<1x1x16xf32>
    %c0_21 = arith.constant 0 : index
    %c0_22 = arith.constant 0 : index
    %c0_23 = arith.constant 0 : index
    %45 = vector.load %arg7[%c0_21, %c0_22, %c0_23] : memref<1x1x16xf32, #tpu.memory_space<vmem>>, vector<1x1x16xf32>
    tpu.vector_store %arg7[%c0_21, %c0_22, %c0_23], %44 {strides = array<i32>} : memref<1x1x16xf32, #tpu.memory_space<vmem>>, vector<1x1x16xf32>,
    return
  }
  func.func @transform_0(%arg0: i32) -> (i32, i32, i32) {
    %c0_i32 = arith.constant 0 : i32
    %c0_i32_0 = arith.constant 0 : i32
    %c0_i32_1 = arith.constant 0 : i32
    return %arg0, %c0_i32, %c0_i32_0 : i32, i32, i32
  }
  func.func @transform_1(%arg0: i32) -> (i32, i32) {
    %c0_i32 = arith.constant 0 : i32
    %c0_i32_0 = arith.constant 0 : i32
    %c0_i32_1 = arith.constant 0 : i32
    return %c0_i32, %c0_i32_0 : i32, i32
  }
  func.func @transform_2(%arg0: i32) -> (i32, i32) {
    %c0_i32 = arith.constant 0 : i32
    %c0_i32_0 = arith.constant 0 : i32
    %c0_i32_1 = arith.constant 0 : i32
    return %c0_i32, %c0_i32_0 : i32, i32
  }
  func.func @transform_3(%arg0: i32) -> (i32, i32, i32) {
    %c0_i32 = arith.constant 0 : i32
    %c0_i32_0 = arith.constant 0 : i32
    %c0_i32_1 = arith.constant 0 : i32
    %c0_i32_2 = arith.constant 0 : i32
    return %c0_i32, %c0_i32_0, %c0_i32_1 : i32, i32, i32
  }
  func.func @transform_4(%arg0: i32) -> (i32, i32) {
    %c0_i32 = arith.constant 0 : i32
    %c0_i32_0 = arith.constant 0 : i32
    %c0_i32_1 = arith.constant 0 : i32
    return %c0_i32, %c0_i32_0 : i32, i32
  }
  func.func @transform_5(%arg0: i32) -> (i32, i32, i32) {
    %c0_i32 = arith.constant 0 : i32
    %c0_i32_0 = arith.constant 0 : i32
    %c0_i32_1 = arith.constant 0 : i32
    return %arg0, %c0_i32, %c0_i32_0 : i32, i32, i32
  }
  func.func @transform_6(%arg0: i32) -> (i32, i32, i32) {
    %c0_i32 = arith.constant 0 : i32
    %c0_i32_0 = arith.constant 0 : i32
    %c0_i32_1 = arith.constant 0 : i32
    return %arg0, %c0_i32, %c0_i32_0 : i32, i32, i32
  }
}

</mosaic_0001>

<bundles_post_ra>
// kernel: tpu_custom_call.1
= control target key start
LH: loop header
LB: loop body
LE: loop exit
PB: predicated region body
PF: predicated region fallthrough
CT: control target
= control target key end

     0   :  { %12 = vsyncpa [#allocation3], 0  ;;  %s2065_s0 = inlined_call_operand.vmem [shape: bf16[2,128,32], index: 0, kind: input, shape index: {}]   ;;  %s2066_s1 = inlined_call_operand.vmem [shape: bf16[32,31], index: 1, kind: input, shape index: {}]   ;;  %s2067_s2 = inlined_call_operand.vmem [shape: f32[1,31], index: 2, kind: input, shape index: {}]   ;;  %s2068_s3 = inlined_call_operand.vmem [shape: f32[4,128,16], index: 3, kind: input, shape index: {}]   ;;  %s2069_s4 = inlined_call_operand.vmem [shape: f32[1,16], index: 4, kind: input, shape index: {}]   ;;  %s2070_s5 = inlined_call_operand.vmem [shape: bf16[2,128,27], index: 5, kind: output, shape index: {0}]   ;;  %s2071_s6 = inlined_call_operand.hbm [shape: f32[2,1,16], index: 6, kind: output, shape index: {1}]  }
   0x1   :  { %14 = vsyncpa [#allocation3 + $0x1], 0  ;;  %s1485_s21 = smov 0   ;;  %s1487_s22 = smov 0  }
   0x2   :  { %s1489_s23 = smov 0   ;;  %s1491_s24 = smov 0  }
   0x3 LB: > { %s1506_s25 = sadd.s32 4294967295, %s1443_s24   ;;  %s1139_s26 = sadd.s32 4294967294, %s1443_s24   ;;  %s1443_s24 = sphi %s1491_s24, %s2077_s24   ;;  %s1439_s23 = sphi %s1489_s23, %s2076_s23   ;;  %s1435_s22 = sphi %s1487_s22, %s2075_s22   ;;  %s1431_s21 = sphi %s1485_s21, %s2074_s21  }
   0x4   : > { %s1510_s27 = sadd.s32 1, %s1443_s24   ;;  %s163_s28 = sadd.s32 1, %s1439_s23 }
   0x5   : > { %s160_s29 = ssub.s32 %s1443_s24, %s1510_s27  ;;  %p173_p0 = scmp.ne.s32.totalorder %s1439_s23, %s1435_s22 }
   0x6   : > { %p161_p1 = scmp.eq.s32.totalorder %s160_s29, 0  ;;  %p174_p2 = scmp.eq.s32.totalorder %s1506_s25, 1 }
   0x7   : > { %p179_p3 = scmp.ne.s32.totalorder %s1435_s22, %s1431_s21  ;;  %p180_p4 = scmp.eq.s32.totalorder %s1139_s26, 1 }
   0x8   : > { %s1521_s30 = scalar_select %p161_p1, %s1439_s23, %s163_s28  }
   0x9   : > { %p1523_p5 = por %p174_p2, %p173_p0  ;;  %p1527_p6 = por %p180_p4, %p179_p3 }
   0xa   : > { %p1142_p7 = scmp.ge.s32.totalorder %s1443_s24, 1  ;;  %p218_p8 = scmp.lt.s32.totalorder %s1443_s24, 3 }
   0xc   : > { %p219_p9 = pnand %p1142_p7, %p218_p8 }
   0xd   : > { %p252_p10 = scmp.lt.s32.totalorder (!%p219_p9), %s1506_s25, 1  ;;  %s250_s16 = sand.u32 (!%p219_p9), 1, %s1435_s22  }
   0xe   : > { %222 = sbr.rel (%p219_p9) target bundleno = 552 (0x228), region = 40  ;;  %s1230_s19 = sshll.u32 (!%p219_p9), %s1506_s25, 4 }
   0xf   : > { %s251_s20 = scalar_lea.vmem (!%p219_p9), [#allocation2], %s250_s16  ;;  %s1057_s9 = scalar_lea.hbm (!%p219_p9), %s2071_s6, %s1230_s19 }
  0x10   : > { %s1059_s26 = sshll.u32 (!%p219_p9), %s251_s20, 4  ;;  %s1044_s10 = scalar_lea.sflag (!%p219_p9), [#allocation3], %s250_s16  ;;  %s1060_s26 = int_to_ptr.vmem [resolvable:$true] %s1059_s26 }
  0x11   : > { %s1383_s11 = scalar_lea.vmem (!%p219_p9), %s1060_s26, 16  ;;  %s1449_s12 = smov (!%p219_p9), [#allocation2]  }
  0x12   : > { %p1384_p11 = scmp.ne.s32.totalorder (!%p219_p9), %s1060_s26, %s1383_s11 }
  0x13   : > { %v1373_v0 = vld [vmem:[%s2066_s1 + $0x8] sm:$0xff]   ;;  %v1374_v1 = vld [vmem:[%s2066_s1] sm:$0xff]   ;;  %s1541_s13 = scalar_select %p252_p10, %s1506_s25, 1  ;;  %vm342_vm0 = vcmask 261120   ;;  %v1445_v10 = vmov 27   ;;  %vm528_vm1 = vcmask 216064  }
  0x14   : > { %1261 = vmatprep.subr.bf16.mxu0 %v1373_v0  ;;  %1281 = vmatprep.subr.bf16.mxu1 %v1373_v0  ;;  %v1560_v11 = vld [vmem:[%s2067_s2] ss:$0 sm:$0xff]  ;;  %v1446_v31 = vmov 28   ;;  %v1447_v33 = vmov 29   ;;  %v1448_v49 = vmov 30   ;;  %vm996_vm2 = vcmask 130048   ;;  %p1385_p12 = pnand %p1384_p11, %p1523_p5 }
  0x15   : > { %1262 = vmatpush3.bf16.msra.mxu0 %v1373_v0  ;;  %1283 = vmatpush3.bf16.msra.mxu1 %v1373_v0  ;;  %s1233_s14 = sshll.u32 %s1541_s13, 6  ;;  %vm1036_vm3 = vcmask 122880   ;;  %s1387_s13 = sshll.u32 %s1449_s12, 4  ;;  %s1388_s13 = int_to_ptr.vmem [resolvable:$false] %s1387_s13 }
  0x16   : > { %1263 = vmatprep.subr.bf16.mxu0 %v1374_v1  ;;  %1282 = vmatprep.subr.bf16.mxu1 %v1374_v1  ;;  %s256_s17 = scalar_lea.vmem %s2065_s0, %s1233_s14  ;;  %s1568_s28 = scalar_lea.vmem %s2070_s5, %s1233_s14 }
  0x17   : > { %v1375_v2 = vld [vmem:[%s256_s17] sm:$0xff]   ;;  %v1377_v4 = vld [vmem:[%s256_s17 + $0x8] sm:$0xff]   ;;  %v1379_v6 = vld [vmem:[%s256_s17 + $0x10] sm:$0xff]   ;;  %1329 = vset.pattern.permute.xlu0 %v1445_v10  ;;  %1328 = vset.pattern.permute.xlu1 %v1445_v10  ;;  %p1386_p13 = pneg %p1385_p12  ;;  %s1389_s25 = scalar_lea.vmem %s1388_s13, 32 }
  0x18   : > { %v1376_v3 = vld [vmem:[%s256_s17 + $0x20] sm:$0xff]   ;;  %1265 = vmatprep.mubr.msk.bf16.mxu0 %vm342_vm0, %v1375_v2  ;;  %v1378_v5 = vld [vmem:[%s256_s17 + $0x28] sm:$0xff]   ;;  %v1381_v7 = vld [vmem:[%s256_s17 + $0x30] sm:$0xff]   ;;  %p1390_p0 = scmp.lt.s32.totalorder %s1060_s26, %s1388_s13  ;;  %p1391_p1 = scmp.lt.s32.totalorder %s1389_s25, %s1383_s11 }
  0x19   : > { %1264 = vmatpush3.bf16.msra.mxu0 %v1374_v1  ;;  %1284 = vmatpush3.bf16.msra.mxu1 %v1374_v1  ;;  %v1380_v8 = vld [vmem:[%s256_s17 + $0x18] sm:$0xff]   ;;  %v547_v1 = vld [vmem:[%s2068_s3 + $0x10] sm:$0xff] }
  0x1a   : > { %1273 = vmatprep.mubr.msk.bf16.mxu1 %vm342_vm0, %v1376_v3  ;;  %v1382_v9 = vld [vmem:[%s256_s17 + $0x38] sm:$0xff]   ;;  %v1184_v2 = vld [vmem:[%s2068_s3 + $0x90] sm:$0xff]  ;;  %p1392_p2 = por %p1391_p1, %p1390_p0 }
  0x1b   : > { %v555_v3 = vld [vmem:[%s2068_s3 + $0x50] sm:$0xff] }
  0x1c   : > { %1266 = vmatmul.mubr.msk.bf16.vlgmr.msra.gmra.mxu0 %vm342_vm0, %v1377_v4  ;;  %1274 = vmatmul.mubr.msk.bf16.vlgmr.msra.gmra.mxu1 %vm342_vm0, %v1378_v5  ;;  %p1393_p3 = pnand %p1392_p2, %p1386_p13 }
  0x1d   : > { %1269 = vmatprep.mubr.msk.bf16.mxu0 %vm342_vm0, %v1379_v6  ;;  %1277 = vmatprep.mubr.msk.bf16.mxu1 %vm342_vm0, %v1381_v7 }
  0x24   : > { %1270 = vmatmul.mubr.msk.bf16.gmra.mxu0 %vm342_vm0, %v1380_v8  ;;  %1278 = vmatmul.mubr.msk.bf16.gmra.mxu1 %vm342_vm0, %v1382_v9  ;;  %v1192_v8 = vld [vmem:[%s2068_s3 + $0xd0] sm:$0xff] }
  0xdc   : > { %v1267_v12 = vpop.f32.mrf.mxu0  ;;  %v1275_v14 = vpop.f32.mrf.mxu1 }
  0xdd   : > { %v1563_v13 = vadd.f32 %v1267_v12, %v1560_v11  ;;  %v442_v15 = vadd.f32 %v1275_v14, %v1560_v11  ;;  %v1224_v14 = vld [vmem:[%s2068_s3 + $0x1d0] sm:$0xff] }
  0xde   : > { %v401_v16 = vpop.f32.mrf.mxu0  ;;  %v433_v19 = vpop.f32.mrf.mxu1 }
  0xdf   : > { %v1237_v17 = vpack.c.bf16 %v1563_v13, %v1563_v13  ;;  %v1574_v18 = vadd.f32 %v1560_v11, %v401_v16  ;;  %573 = vperm.xlu1 %1328, %v1563_v13   ;;  %v1245_v20 = vpack.c.bf16 %v442_v15, %v442_v15  ;;  %613 = vperm.xlu0 %1329, %v442_v15  }
  0xe0   : > { %v1268_v21 = vpop.f32.mrf.mxu0  ;;  %v1578_v22 = vadd.f32 %v1560_v11, %v433_v19  ;;  %v1276_v25 = vpop.f32.mrf.mxu1 }
  0xe1   : > { %531 = vst.msk [vmem:[%s1568_s28 + $0x8] sm:$0xf] %vm528_vm1, %v1237_v17  ;;  %v1235_v23 = vpack.c.bf16 %v1574_v18, %v1574_v18  ;;  %v1585_v24 = vadd.f32 %v1268_v21, %v1560_v11  ;;  %539 = vst.msk [vmem:[%s1568_s28 + $0x28] sm:$0xf] %vm528_vm1, %v1245_v20  ;;  %v1592_v28 = vadd.f32 %v1276_v25, %v1560_v11 }
  0xe2   : > { %v1243_v26 = vpack.c.bf16 %v1578_v22, %v1578_v22  ;;  %v404_v27 = vpop.f32.mrf.mxu0  ;;  %v436_v32 = vpop.f32.mrf.mxu1 }
  0xe3   : > { %529 = vst.msk [vmem:[%s1568_s28] sm:$0xf] %vm528_vm1, %v1235_v23  ;;  %v1238_v29 = vpack.c.bf16 %v1585_v24, %v1585_v24  ;;  %v1599_v30 = vadd.f32 %v1560_v11, %v404_v27  ;;  %1330 = vset.pattern.permute.xlu1 %v1446_v31  ;;  %1333 = vset.pattern.permute.xlu0 %v1447_v33 }
  0xe4   : > { %537 = vst.msk [vmem:[%s1568_s28 + $0x20] sm:$0xf] %vm528_vm1, %v1243_v26  ;;  %v1246_v34 = vpack.c.bf16 %v1592_v28, %v1592_v28  ;;  %683 = vperm.xlu1 %1330, %v1563_v13   ;;  %v1609_v35 = vadd.f32 %v1560_v11, %v436_v32  ;;  %v1271_v36 = vpop.f32.mrf.mxu0  ;;  %828 = vperm.xlu0 %1333, %v442_v15   ;;  %v1279_v39 = vpop.f32.mrf.mxu1  ;;  %v1216_v26 = vld [vmem:[%s2068_s3 + $0x190] sm:$0xff]  ;;  %v553_v32 = vld [vmem:[%s2068_s3 + $0x40] sm:$0xff] }
  0xe5   : > { %532 = vst.msk [vmem:[%s1568_s28 + $0xc] sm:$0xf] %vm528_vm1, %v1238_v29  ;;  %v1236_v37 = vpack.c.bf16 %v1599_v30, %v1599_v30  ;;  %v1616_v38 = vadd.f32 %v1271_v36, %v1560_v11  ;;  %v1623_v41 = vadd.f32 %v1279_v39, %v1560_v11 }
  0xe6   : > { %540 = vst.msk [vmem:[%s1568_s28 + $0x2c] sm:$0xf] %vm528_vm1, %v1246_v34  ;;  %v1244_v40 = vpack.c.bf16 %v1609_v35, %v1609_v35  ;;  %v417_v42 = vpop.f32.mrf.mxu0  ;;  %v449_v45 = vpop.f32.mrf.mxu1  ;;  %v1190_v34 = vld [vmem:[%s2068_s3 + $0xc0] sm:$0xff] }
  0xe7   : > { %530 = vst.msk [vmem:[%s1568_s28 + $0x4] sm:$0xf] %vm528_vm1, %v1236_v37  ;;  %v1241_v43 = vpack.c.bf16 %v1616_v38, %v1616_v38  ;;  %v1630_v44 = vadd.f32 %v1560_v11, %v417_v42  ;;  %v1249_v46 = vpack.c.bf16 %v1623_v41, %v1623_v41  ;;  %v1637_v47 = vadd.f32 %v1560_v11, %v449_v45  ;;  %v545_v37 = vld [vmem:[%s2068_s3] sm:$0xff] }
  0xe8   : > { %538 = vst.msk [vmem:[%s1568_s28 + $0x24] sm:$0xf] %vm528_vm1, %v1244_v40  ;;  %715 = vperm.xlu1 %1330, %v442_v15   ;;  %v1272_v48 = vpop.f32.mrf.mxu0  ;;  %1334 = vset.pattern.permute.xlu0 %v1448_v49  ;;  %v1280_v52 = vpop.f32.mrf.mxu1 }
  0xe9   : > { %535 = vst.msk [vmem:[%s1568_s28 + $0x18] sm:$0xf] %vm528_vm1, %v1241_v43  ;;  %v1239_v50 = vpack.c.bf16 %v1630_v44, %v1630_v44  ;;  %v1645_v51 = vadd.f32 %v1272_v48, %v1560_v11  ;;  %941 = vperm.xlu0 %1334, %v442_v15   ;;  %543 = vst.msk [vmem:[%s1568_s28 + $0x38] sm:$0xf] %vm528_vm1, %v1249_v46  ;;  %v1247_v53 = vpack.c.bf16 %v1637_v47, %v1637_v47 }
  0xea   : > { %v1652_v54 = vadd.f32 %v1280_v52, %v1560_v11  ;;  %v420_v55 = vpop.f32.mrf.mxu0  ;;  %v452_v58 = vpop.f32.mrf.mxu1 }
  0xeb   : > { %533 = vst.msk [vmem:[%s1568_s28 + $0x10] sm:$0xf] %vm528_vm1, %v1239_v50  ;;  %v1242_v56 = vpack.c.bf16 %v1645_v51, %v1645_v51  ;;  %v1659_v57 = vadd.f32 %v1560_v11, %v420_v55  ;;  %541 = vst.msk [vmem:[%s1568_s28 + $0x30] sm:$0xf] %vm528_vm1, %v1247_v53  ;;  %v1667_v60 = vadd.f32 %v1560_v11, %v452_v58  ;;  %v1208_v11 = vld [vmem:[%s2068_s3 + $0x150] sm:$0xff] }
  0xec   : > { %1331 = vset.pattern.permute.xlu1 %v1447_v33  ;;  %v1250_v59 = vpack.c.bf16 %v1652_v54, %v1652_v54 }
  0xed   : > { %796 = vperm.xlu1 %1331, %v1563_v13   ;;  %536 = vst.msk [vmem:[%s1568_s28 + $0x1c] sm:$0xf] %vm528_vm1, %v1242_v56  ;;  %v1240_v61 = vpack.c.bf16 %v1659_v57, %v1659_v57  ;;  %1335 = vset.pattern.permute.xlu0 %v1445_v10  ;;  %v1248_v62 = vpack.c.bf16 %v1667_v60, %v1667_v60 }
  0xee   : > { %544 = vst.msk [vmem:[%s1568_s28 + $0x3c] sm:$0xf] %vm528_vm1, %v1250_v59  ;;  %563 = vperm.xlu0 %1335, %v1574_v18  }
  0xef   : > { %534 = vst.msk [vmem:[%s1568_s28 + $0x14] sm:$0xf] %vm528_vm1, %v1240_v61  ;;  %542 = vst.msk [vmem:[%s1568_s28 + $0x34] sm:$0xf] %vm528_vm1, %v1248_v62  ;;  %v1193_v62 = vld [vmem:[%s2068_s3 + $0xd8] sm:$0xff] }
  0xf1   : > { %1332 = vset.pattern.permute.xlu1 %v1448_v49 }
  0xf2   : > { %909 = vperm.xlu1 %1332, %v1563_v13   ;;  %603 = vperm.xlu0 %1335, %v1578_v22  }
  0xf6   : > { %1337 = vset.pattern.permute.xlu1 %v1446_v31  ;;  %1336 = vset.pattern.permute.xlu0 %v1446_v31 }
  0xf7   : > { %707 = vperm.xlu1 %1337, %v1578_v22   ;;  %675 = vperm.xlu0 %1336, %v1574_v18  }
  0xfb   : > { %1338 = vset.pattern.permute.xlu1 %v1447_v33  ;;  %1339 = vset.pattern.permute.xlu0 %v1448_v49 }
  0xfc   : > { %788 = vperm.xlu1 %1338, %v1574_v18   ;;  %901 = vperm.xlu0 %1339, %v1574_v18   ;;  %v1200_v18 = vld [vmem:[%s2068_s3 + $0x110] sm:$0xff] }
 0x100   : > { %820 = vperm.xlu1 %1338, %v1578_v22   ;;  %1342 = vset.pattern.permute.xlu0 %v1446_v31 }
 0x101   : > { %687 = vperm.xlu0 %1342, %v1585_v24  }
 0x104   : > { %1340 = vset.pattern.permute.xlu1 %v1448_v49 }
 0x105   : > { %933 = vperm.xlu1 %1340, %v1578_v22   ;;  %719 = vperm.xlu0 %1342, %v1592_v28  }
 0x109   : > { %1341 = vset.pattern.permute.xlu1 %v1445_v10  ;;  %1346 = vset.pattern.permute.xlu0 %v1445_v10 }
 0x10a   : > { %578 = vperm.xlu1 %1341, %v1585_v24   ;;  %568 = vperm.xlu0 %1346, %v1599_v30  }
 0x10e   : > { %618 = vperm.xlu1 %1341, %v1592_v28   ;;  %1349 = vset.pattern.permute.xlu0 %v1446_v31 }
 0x10f   : > { %711 = vperm.xlu0 %1349, %v1609_v35  }
 0x112   : > { %1343 = vset.pattern.permute.xlu1 %v1447_v33 }
 0x113   : > { %800 = vperm.xlu1 %1343, %v1585_v24   ;;  %1350 = vset.pattern.permute.xlu0 %v1447_v33 }
 0x114   : > { %792 = vperm.xlu0 %1350, %v1599_v30  }
 0x117   : > { %1344 = vset.pattern.permute.xlu1 %v1448_v49 }
 0x118   : > { %913 = vperm.xlu1 %1344, %v1585_v24   ;;  %1354 = vset.pattern.permute.xlu0 %v1445_v10 }
 0x119   : > { %593 = vperm.xlu0 %1354, %v1616_v38  }
 0x11c   : > { %1345 = vset.pattern.permute.xlu1 %v1447_v33 }
 0x11d   : > { %832 = vperm.xlu1 %1345, %v1592_v28   ;;  %633 = vperm.xlu0 %1354, %v1623_v41  }
 0x121   : > { %1347 = vset.pattern.permute.xlu1 %v1445_v10  ;;  %583 = vperm.xlu0 %1354, %v1630_v44  }
 0x122   : > { %608 = vperm.xlu1 %1347, %v1609_v35  }
 0x125   : > { %623 = vperm.xlu0 %1354, %v1637_v47  }
 0x126   : > { %1348 = vset.pattern.permute.xlu1 %v1446_v31 }
 0x127   : > { %679 = vperm.xlu1 %1348, %v1599_v30  }
 0x129   : > { %1359 = vset.pattern.permute.xlu0 %v1447_v33 }
 0x12a   : > { %804 = vperm.xlu0 %1359, %v1630_v44  }
 0x12b   : > { %1351 = vset.pattern.permute.xlu1 %v1448_v49 }
 0x12c   : > { %905 = vperm.xlu1 %1351, %v1599_v30  }
 0x12e   : > { %1360 = vset.pattern.permute.xlu0 %v1448_v49 }
 0x12f   : > { %917 = vperm.xlu0 %1360, %v1630_v44  }
 0x130   : > { %1352 = vset.pattern.permute.xlu1 %v1447_v33 }
 0x131   : > { %824 = vperm.xlu1 %1352, %v1609_v35  }
 0x133   : > { %1363 = vset.pattern.permute.xlu0 %v1446_v31 }
 0x134   : > { %703 = vperm.xlu0 %1363, %v1645_v51  }
 0x135   : > { %1353 = vset.pattern.permute.xlu1 %v1448_v49 }
 0x136   : > { %937 = vperm.xlu1 %1353, %v1609_v35   ;;  %v1182_v35 = vld [vmem:[%s2068_s3 + $0x80] sm:$0xff] }
 0x138   : > { %735 = vperm.xlu0 %1363, %v1652_v54  }
 0x13a   : > { %1355 = vset.pattern.permute.xlu1 %v1446_v31 }
 0x13b   : > { %699 = vperm.xlu1 %1355, %v1616_v38  }
 0x13c   : > { %1364 = vset.pattern.permute.xlu0 %v1447_v33 }
 0x13d   : > { %816 = vperm.xlu0 %1364, %v1645_v51  }
 0x13f   : > { %731 = vperm.xlu1 %1355, %v1623_v41  }
 0x141   : > { %1365 = vset.pattern.permute.xlu0 %v1448_v49 }
 0x142   : > { %929 = vperm.xlu0 %1365, %v1645_v51  }
 0x143   : > { %1356 = vset.pattern.permute.xlu1 %v1447_v33 }
 0x144   : > { %812 = vperm.xlu1 %1356, %v1616_v38  }
 0x146   : > { %1366 = vset.pattern.permute.xlu0 %v1446_v31 }
 0x147   : > { %695 = vperm.xlu0 %1366, %v1659_v57  }
 0x148   : > { %1357 = vset.pattern.permute.xlu1 %v1448_v49 }
 0x149   : > { %925 = vperm.xlu1 %1357, %v1616_v38  }
 0x14b   : > { %727 = vperm.xlu0 %1366, %v1667_v60  }
 0x14d   : > { %1358 = vset.pattern.permute.xlu1 %v1446_v31 }
 0x14e   : > { %691 = vperm.xlu1 %1358, %v1630_v44   ;;  %v1198_v44 = vld [vmem:[%s2068_s3 + $0x100] sm:$0xff] }
 0x14f   : > { %1370 = vset.pattern.permute.xlu0 %v1447_v33 }
 0x150   : > { %840 = vperm.xlu0 %1370, %v1667_v60  }
 0x152   : > { %723 = vperm.xlu1 %1358, %v1637_v47  }
 0x154   : > { %1371 = vset.pattern.permute.xlu0 %v1448_v49 }
 0x155   : > { %953 = vperm.xlu0 %1371, %v1667_v60  }
 0x156   : > { %1361 = vset.pattern.permute.xlu1 %v1447_v33 }
 0x157   : > { %836 = vperm.xlu1 %1361, %v1637_v47  }
 0x159   : > { %961 = vperm.xlu0 %1371, %v1652_v54  }
 0x15a   : > { %v574_v63 = vpop.permute.xlu1 %573  ;;  %v614_v0 = vpop.permute.xlu0 %613 }
 0x15b   : > { %1362 = vset.pattern.permute.xlu1 %v1445_v10  ;;  %v643_v5 = vmul.f32 %v574_v63, %v547_v1  ;;  %v651_v9 = vmul.f32 %v614_v0, %v555_v3  ;;  %v548_v0 = vld [vmem:[%s2068_s3 + $0x18] sm:$0xff] }
 0x15c   : > { %598 = vperm.xlu1 %1362, %v1645_v51   ;;  %v1206_v51 = vld [vmem:[%s2068_s3 + $0x140] sm:$0xff] }
 0x15f   : > { %v684_v4 = vpop.permute.xlu1 %683  ;;  %v829_v7 = vpop.permute.xlu0 %828 }
 0x160   : > { %v740_v6 = vmul.f32 %v1184_v2, %v684_v4  ;;  %638 = vperm.xlu1 %1362, %v1652_v54   ;;  %v861_v16 = vmul.f32 %v1208_v11, %v829_v7 }
 0x162   : > { %v756_v10 = vadd.f32 %v740_v6, %v643_v5 }
 0x163   : > { %v716_v12 = vpop.permute.xlu1 %715 }
 0x164   : > { %v748_v13 = vmul.f32 %v1192_v8, %v716_v12  ;;  %588 = vperm.xlu1 %1362, %v1659_v57   ;;  %v942_v15 = vpop.permute.xlu0 %941 }
 0x165   : > { %v974_v20 = vmul.f32 %v1224_v14, %v942_v15  ;;  %v1209_v15 = vld [vmem:[%s2068_s3 + $0x158] sm:$0xff] }
 0x166   : > { %v764_v17 = vadd.f32 %v748_v13, %v651_v9 }
 0x168   : > { %v877_v19 = vadd.f32 %v861_v16, %v764_v17  ;;  %v797_v21 = vpop.permute.xlu1 %796  ;;  %628 = vperm.xlu1 %1362, %v1667_v60  }
 0x169   : > { %v853_v22 = vmul.f32 %v1200_v18, %v797_v21  ;;  %v564_v24 = vpop.permute.xlu0 %563  ;;  %v546_v21 = vld [vmem:[%s2068_s3 + $0x8] sm:$0xff] }
 0x16a   : > { %v1788_v23 = vadd.f32 %v974_v20, %v877_v19  ;;  %v641_v45 = vmul.f32 %v564_v24, %v545_v37  ;;  %v1199_v24 = vld [vmem:[%s2068_s3 + $0x108] sm:$0xff] }
 0x16b   : > { %v869_v25 = vadd.f32 %v853_v22, %v756_v10  ;;  %v1183_v22 = vld [vmem:[%s2068_s3 + $0x88] sm:$0xff] }
 0x16c   : > { %1367 = vset.pattern.permute.xlu1 %v1447_v33  ;;  %v554_v37 = vld [vmem:[%s2068_s3 + $0x48] sm:$0xff] }
 0x16d   : > { %v910_v27 = vpop.permute.xlu1 %909  ;;  %808 = vperm.xlu1 %1367, %v1659_v57   ;;  %v604_v30 = vpop.permute.xlu0 %603 }
 0x16e   : > { %v966_v29 = vmul.f32 %v1216_v26, %v910_v27  ;;  %v649_v38 = vmul.f32 %v604_v30, %v553_v32  ;;  %v1214_v27 = vld [vmem:[%s2068_s3 + $0x180] sm:$0xff] }
 0x170   : > { %v1795_v31 = vadd.f32 %v966_v29, %v869_v25 }
 0x171   : > { %1368 = vset.pattern.permute.xlu1 %v1448_v49 }
 0x172   : > { %v708_v36 = vpop.permute.xlu1 %707  ;;  %921 = vperm.xlu1 %1368, %v1659_v57   ;;  %v676_v40 = vpop.permute.xlu0 %675 }
 0x173   : > { %v746_v39 = vmul.f32 %v1190_v34, %v708_v36  ;;  %v738_v42 = vmul.f32 %v1182_v35, %v676_v40  ;;  %v1215_v35 = vld [vmem:[%s2068_s3 + $0x188] sm:$0xff] }
 0x175   : > { %v762_v43 = vadd.f32 %v746_v39, %v649_v38  ;;  %v754_v48 = vadd.f32 %v738_v42, %v641_v45  ;;  %v1191_v42 = vld [vmem:[%s2068_s3 + $0xc8] sm:$0xff] }
 0x176   : > { %945 = vperm.xlu1 %1368, %v1592_v28   ;;  %v1222_v28 = vld [vmem:[%s2068_s3 + $0x1c0] sm:$0xff] }
 0x177   : > { %v789_v46 = vpop.permute.xlu1 %788  ;;  %v902_v53 = vpop.permute.xlu0 %901 }
 0x178   : > { %v851_v50 = vmul.f32 %v1198_v44, %v789_v46  ;;  %v964_v36 = vmul.f32 %v1214_v27, %v902_v53  ;;  %v1207_v46 = vld [vmem:[%s2068_s3 + $0x148] sm:$0xff]  ;;  %v1189_v27 = vld [vmem:[%s2068_s3 + $0xb8] sm:$0xff] }
 0x17a   : > { %v867_v52 = vadd.f32 %v851_v50, %v754_v48  ;;  %949 = vperm.xlu1 %1368, %v1637_v47  }
 0x17b   : > { %v821_v55 = vpop.permute.xlu1 %820 }
 0x17c   : > { %v859_v56 = vmul.f32 %v1206_v51, %v821_v55  ;;  %v688_v59 = vpop.permute.xlu0 %687  ;;  %v980_v40 = vadd.f32 %v964_v36, %v867_v52 }
 0x17e   : > { %v875_v57 = vadd.f32 %v859_v56, %v762_v43  ;;  %1369 = vset.pattern.permute.xlu1 %v1447_v33  ;;  %v556_v33 = vld [vmem:[%s2068_s3 + $0x58] sm:$0xff]  ;;  %v997_v51 = vsel %vm996_vm2, %v980_v40, 0.0 }
 0x17f   : > { %844 = vperm.xlu1 %1369, %v1623_v41  }
 0x180   : > { %v934_v58 = vpop.permute.xlu1 %933  ;;  %v720_v63 = vpop.permute.xlu0 %719 }
 0x181   : > { %v972_v60 = vmul.f32 %v1222_v28, %v934_v58  ;;  %v749_v2 = vmul.f32 %v1193_v62, %v720_v63  ;;  %v1000_v28 = vsel %vm996_vm2, %v1795_v31, 0.0 }
 0x183   : > { %v1824_v61 = vadd.f32 %v972_v60, %v875_v57  ;;  %848 = vperm.xlu1 %1369, %v1652_v54   ;;  %v1185_v54 = vld [vmem:[%s2068_s3 + $0x98] sm:$0xff] }
 0x184   : > { %v741_v6 = vmul.f32 %v1185_v54, %v688_v59 }
 0x185   : > { %v579_v47 = vpop.permute.xlu1 %578  ;;  %v569_v13 = vpop.permute.xlu0 %568 }
 0x186   : > { %v644_v4 = vmul.f32 %v579_v47, %v548_v0  ;;  %v642_v29 = vmul.f32 %v569_v13, %v546_v21 }
 0x187   : > { %1372 = vset.pattern.permute.xlu1 %v1448_v49  ;;  %v1201_v49 = vld [vmem:[%s2068_s3 + $0x118] sm:$0xff] }
 0x188   : > { %957 = vperm.xlu1 %1372, %v1623_v41   ;;  %v757_v8 = vadd.f32 %v741_v6, %v644_v4  ;;  %v1217_v41 = vld [vmem:[%s2068_s3 + $0x198] sm:$0xff] }
 0x189   : > { %v619_v1 = vpop.permute.xlu1 %618 }
 0x18a   : > { %v652_v3 = vmul.f32 %v619_v1, %v556_v33  ;;  %v712_v19 = vpop.permute.xlu0 %711 }
 0x18b   : > { %v747_v48 = vmul.f32 %v1191_v42, %v712_v19 }
 0x18c   : > { %v765_v5 = vadd.f32 %v749_v2, %v652_v3 }
 0x18e   : > { %v801_v7 = vpop.permute.xlu1 %800 }
 0x18f   : > { %v854_v9 = vmul.f32 %v1201_v49, %v801_v7  ;;  %v793_v25 = vpop.permute.xlu0 %792 }
 0x190   : > { %v852_v32 = vmul.f32 %v1199_v24, %v793_v25  ;;  %v1188_v25 = vld [vmem:[%s2068_s3 + $0xb0] sm:$0xff] }
 0x191   : > { %v870_v10 = vadd.f32 %v854_v9, %v757_v8 }
 0x193   : > { %v914_v11 = vpop.permute.xlu1 %913 }
 0x194   : > { %v967_v12 = vmul.f32 %v1217_v41, %v914_v11  ;;  %v594_v50 = vpop.permute.xlu0 %593  ;;  %v1186_v41 = vld [vmem:[%s2068_s3 + $0xa0] sm:$0xff] }
 0x196   : > { %v983_v14 = vadd.f32 %v967_v12, %v870_v10  ;;  %v549_v12 = vld [vmem:[%s2068_s3 + $0x20] sm:$0xff] }
 0x198   : > { %v833_v16 = vpop.permute.xlu1 %832  ;;  %v1002_v60 = vsel %vm996_vm2, %v983_v14, 0.0  ;;  %v1883_v47 = vpop.permute.xlu0 %633 }
 0x199   : > { %v862_v17 = vmul.f32 %v1209_v15, %v833_v16  ;;  %v1202_v16 = vld [vmem:[%s2068_s3 + $0x120] sm:$0xff] }
 0x19b   : > { %v1850_v18 = vadd.f32 %v862_v17, %v765_v5 }
 0x19c   : > { %v584_v0 = vpop.permute.xlu0 %583 }
 0x19d   : > { %v609_v20 = vpop.permute.xlu1 %608  ;;  %v645_v15 = vmul.f32 %v584_v0, %v549_v12 }
 0x19e   : > { %v650_v44 = vmul.f32 %v609_v20, %v554_v37  ;;  %v552_v20 = vld [vmem:[%s2068_s3 + $0x38] sm:$0xff]  ;;  %v1187_v37 = vld [vmem:[%s2068_s3 + $0xa8] sm:$0xff] }
 0x1a0   : > { %v763_v52 = vadd.f32 %v747_v48, %v650_v44  ;;  %v1891_v54 = vpop.permute.xlu0 %623  ;;  %v1220_v48 = vld [vmem:[%s2068_s3 + $0x1b0] sm:$0xff] }
 0x1a2   : > { %v680_v26 = vpop.permute.xlu1 %679 }
 0x1a3   : > { %v739_v30 = vmul.f32 %v1183_v22, %v680_v26  ;;  %v551_v22 = vld [vmem:[%s2068_s3 + $0x30] sm:$0xff]  ;;  %v1218_v26 = vld [vmem:[%s2068_s3 + $0x1a0] sm:$0xff] }
 0x1a5   : > { %v755_v34 = vadd.f32 %v739_v30, %v642_v29  ;;  %v805_v3 = vpop.permute.xlu0 %804  ;;  %v550_v29 = vld [vmem:[%s2068_s3 + $0x28] sm:$0xff]  ;;  %v1204_v30 = vld [vmem:[%s2068_s3 + $0x130] sm:$0xff] }
 0x1a6   : > { %v855_v24 = vmul.f32 %v1202_v16, %v805_v3 }
 0x1a7   : > { %v906_v38 = vpop.permute.xlu1 %905  ;;  %v868_v39 = vadd.f32 %v852_v32, %v755_v34 }
 0x1a8   : > { %v965_v43 = vmul.f32 %v1215_v35, %v906_v38  ;;  %v647_v35 = vmul.f32 %v594_v50, %v551_v22 }
 0x1aa   : > { %v981_v45 = vadd.f32 %v965_v43, %v868_v39  ;;  %v918_v4 = vpop.permute.xlu0 %917  ;;  %v1203_v39 = vld [vmem:[%s2068_s3 + $0x128] sm:$0xff] }
 0x1ab   : > { %v968_v40 = vmul.f32 %v1218_v26, %v918_v4 }
 0x1ac   : > { %v998_v53 = vsel %vm996_vm2, %v981_v45, 0.0  ;;  %v825_v55 = vpop.permute.xlu1 %824  ;;  %v1205_v45 = vld [vmem:[%s2068_s3 + $0x138] sm:$0xff] }
 0x1ad   : > { %v999_v56 = vadd.f32 %v998_v53, %v997_v51  ;;  %v860_v57 = vmul.f32 %v1207_v46, %v825_v55 }
 0x1af   : > { %v1001_v58 = vadd.f32 %v1000_v28, %v999_v56  ;;  %v1880_v59 = vadd.f32 %v860_v57, %v763_v52  ;;  %v704_v6 = vpop.permute.xlu0 %703  ;;  %v1219_v56 = vld [vmem:[%s2068_s3 + $0x1a8] sm:$0xff] }
 0x1b0   : > { %v745_v42 = vmul.f32 %v1189_v27, %v704_v6  ;;  %v1210_v27 = vld [vmem:[%s2068_s3 + $0x160] sm:$0xff] }
 0x1b1   : > { %v1885_v62 = vpop.permute.xlu1 %937  ;;  %v1887_v63 = vadd.f32 %v1002_v60, %v1001_v58  ;;  %v1221_v60 = vld [vmem:[%s2068_s3 + $0x1b8] sm:$0xff] }
 0x1b3   : > { %v1897_v8 = vpop.permute.xlu0 %735 }
 0x1b6   : > { %v700_v33 = vpop.permute.xlu1 %699 }
 0x1b7   : > { %v744_v36 = vmul.f32 %v1188_v25, %v700_v33  ;;  %v1195_v25 = vld [vmem:[%s2068_s3 + $0xe8] sm:$0xff] }
 0x1b8   : > { %v817_v10 = vpop.permute.xlu0 %816 }
 0x1b9   : > { %v760_v52 = vadd.f32 %v744_v36, %v647_v35  ;;  %v858_v57 = vmul.f32 %v1205_v45, %v817_v10 }
 0x1ba   : > { %v1889_v1 = vpop.permute.xlu1 %731 }
 0x1bd   : > { %v930_v17 = vpop.permute.xlu0 %929 }
 0x1bf   : > { %v813_v2 = vpop.permute.xlu1 %812 }
 0x1c0   : > { %v857_v46 = vmul.f32 %v1204_v30, %v813_v2  ;;  %v1223_v2 = vld [vmem:[%s2068_s3 + $0x1c8] sm:$0xff] }
 0x1c1   : > { %v973_v12 = vmul.f32 %v1223_v2, %v1885_v62 }
 0x1c2   : > { %v696_v38 = vpop.permute.xlu0 %695  ;;  %v873_v33 = vadd.f32 %v857_v46, %v760_v52  ;;  %v1016_v52 = vsel %vm996_vm2, %v1788_v23, 0.0  ;;  %v1212_v23 = vld [vmem:[%s2068_s3 + $0x170] sm:$0xff] }
 0x1c3   : > { %v743_v50 = vmul.f32 %v1187_v37, %v696_v38  ;;  %v1012_v38 = vsel %vm996_vm2, %v1824_v61, 0.0  ;;  %v559_v61 = vld [vmem:[%s2068_s3 + $0x70] sm:$0xff] }
 0x1c4   : > { %v926_v31 = vpop.permute.xlu1 %925 }
 0x1c5   : > { %v970_v28 = vmul.f32 %v1220_v48, %v926_v31 }
 0x1c7   : > { %v986_v10 = vadd.f32 %v970_v28, %v873_v33  ;;  %v1227_v33 = vld [vmem:[%s2068_s3 + $0x1e8] sm:$0xff] }
 0x1c9   : > { %v692_v5 = vpop.permute.xlu1 %691  ;;  %v1008_v62 = vsel %vm996_vm2, %v986_v10, 0.0  ;;  %v1229_v10 = vld [vmem:[%s2068_s3 + $0x1f8] sm:$0xff] }
 0x1ca   : > { %v742_v13 = vmul.f32 %v1186_v41, %v692_v5  ;;  %v971_v41 = vmul.f32 %v1221_v60, %v930_v17  ;;  %v1225_v17 = vld [vmem:[%s2068_s3 + $0x1d8] sm:$0xff] }
 0x1cc   : > { %v758_v19 = vadd.f32 %v742_v13, %v645_v15 }
 0x1cd   : > { %v1893_v49 = vpop.permute.xlu1 %723 }
 0x1ce   : > { %v871_v32 = vadd.f32 %v855_v24, %v758_v19  ;;  %v1194_v19 = vld [vmem:[%s2068_s3 + $0xe0] sm:$0xff]  ;;  %v989_v24 = vadd.f32 %v973_v12, %v1880_v59  ;;  %v1228_v12 = vld [vmem:[%s2068_s3 + $0x1f0] sm:$0xff] }
 0x1cf   : > { %v1226_v59 = vld [vmem:[%s2068_s3 + $0x1e0] sm:$0xff] }
 0x1d0   : > { %v984_v51 = vadd.f32 %v968_v40, %v871_v32  ;;  %v750_v32 = vmul.f32 %v1194_v19, %v1893_v49  ;;  %v1211_v49 = vld [vmem:[%s2068_s3 + $0x168] sm:$0xff] }
 0x1d2   : > { %v1895_v7 = vpop.permute.xlu1 %836  ;;  %v1004_v6 = vsel %vm996_vm2, %v984_v51, 0.0  ;;  %v1196_v51 = vld [vmem:[%s2068_s3 + $0xf0] sm:$0xff] }
 0x1d3   : > { %v1005_v13 = vadd.f32 %v1004_v6, %v1887_v63  ;;  %v557_v63 = vld [vmem:[%s2068_s3 + $0x60] sm:$0xff]  ;;  %v752_v2 = vmul.f32 %v1196_v51, %v1889_v1 }
 0x1d7   : > { %v599_v9 = vpop.permute.xlu1 %598 }
 0x1d8   : > { %v648_v34 = vmul.f32 %v599_v9, %v552_v20  ;;  %v728_v9 = vpop.permute.xlu0 %727  ;;  %v558_v20 = vld [vmem:[%s2068_s3 + $0x68] sm:$0xff] }
 0x1d9   : > { %v751_v40 = vmul.f32 %v1195_v25, %v728_v9 }
 0x1da   : > { %v761_v53 = vadd.f32 %v745_v42, %v648_v34  ;;  %v863_v42 = vmul.f32 %v1210_v27, %v1895_v7 }
 0x1db   : > { %v1902_v11 = vpop.permute.xlu1 %638 }
 0x1dc   : > { %v874_v3 = vadd.f32 %v858_v57, %v761_v53  ;;  %v841_v26 = vpop.permute.xlu0 %840 }
 0x1de   : > { %v987_v15 = vadd.f32 %v971_v41, %v874_v3 }
 0x1df   : > { %v589_v14 = vpop.permute.xlu1 %588 }
 0x1e0   : > { %v646_v43 = vmul.f32 %v589_v14, %v550_v29  ;;  %v1010_v34 = vsel %vm996_vm2, %v987_v15, 0.0  ;;  %v954_v53 = vpop.permute.xlu0 %953 }
 0x1e1   : > { %v977_v9 = vmul.f32 %v1227_v33, %v954_v53 }
 0x1e2   : > { %v759_v58 = vadd.f32 %v743_v50, %v646_v43  ;;  %v1014_v43 = vsel %vm996_vm2, %v989_v24, 0.0 }
 0x1e3   : > { %v629_v21 = vpop.permute.xlu1 %628 }
 0x1e4   : > { %v654_v35 = vmul.f32 %v629_v21, %v558_v20  ;;  %v560_v21 = vld [vmem:[%s2068_s3 + $0x78] sm:$0xff] }
 0x1e5   : > { %v656_v28 = vmul.f32 %v1902_v11, %v560_v21 }
 0x1e6   : > { %v767_v45 = vadd.f32 %v751_v40, %v654_v35 }
 0x1e8   : > { %v809_v44 = vpop.permute.xlu1 %808 }
 0x1e9   : > { %v856_v55 = vmul.f32 %v1203_v39, %v809_v44  ;;  %v653_v39 = vmul.f32 %v1891_v54, %v557_v63  ;;  %v1197_v54 = vld [vmem:[%s2068_s3 + $0xf8] sm:$0xff] }
 0x1ea   : > { %v753_v60 = vmul.f32 %v1197_v54, %v1897_v8 }
 0x1eb   : > { %v872_v4 = vadd.f32 %v856_v55, %v759_v58  ;;  %v766_v7 = vadd.f32 %v750_v32, %v653_v39  ;;  %v1213_v58 = vld [vmem:[%s2068_s3 + $0x178] sm:$0xff] }
 0x1ec   : > { %v769_v8 = vadd.f32 %v753_v60, %v656_v28 }
 0x1ed   : > { %v922_v0 = vpop.permute.xlu1 %921  ;;  %v879_v57 = vadd.f32 %v863_v42, %v766_v7 }
 0x1ee   : > { %v969_v5 = vmul.f32 %v1219_v56, %v922_v0  ;;  %v864_v56 = vmul.f32 %v1211_v49, %v841_v26 }
 0x1f0   : > { %v985_v31 = vadd.f32 %v969_v5, %v872_v4  ;;  %v880_v11 = vadd.f32 %v864_v56, %v767_v45 }
 0x1f1   : > { %v946_v14 = vpop.permute.xlu1 %945 }
 0x1f2   : > { %v1006_v16 = vsel %vm996_vm2, %v985_v31, 0.0  ;;  %v975_v36 = vmul.f32 %v1225_v17, %v946_v14  ;;  %v962_v31 = vpop.permute.xlu0 %961 }
 0x1f3   : > { %v1007_v22 = vadd.f32 %v1006_v16, %v1005_v13  ;;  %v993_v13 = vadd.f32 %v977_v9, %v880_v11  ;;  %v979_v20 = vmul.f32 %v1229_v10, %v962_v31 }
 0x1f4   : > { %v991_v46 = vadd.f32 %v975_v36, %v1850_v18  ;;  %v655_v18 = vmul.f32 %v1883_v47, %v559_v61 }
 0x1f5   : > { %v1009_v29 = vadd.f32 %v1008_v62, %v1007_v22  ;;  %v950_v30 = vpop.permute.xlu1 %949  ;;  %v1022_v24 = vsel %vm996_vm2, %v993_v13, 0.0 }
 0x1f6   : > { %v976_v48 = vmul.f32 %v1226_v59, %v950_v30  ;;  %v1018_v3 = vsel %vm996_vm2, %v991_v46, 0.0  ;;  %v768_v1 = vadd.f32 %v752_v2, %v655_v18  ;;  %v1034_v59 = vld [vmem:[%s2069_s4] sm:$0x1] }
 0x1f7   : > { %v1011_v37 = vadd.f32 %v1010_v34, %v1009_v29 }
 0x1f8   : > { %v992_v4 = vadd.f32 %v976_v48, %v879_v57 }
 0x1f9   : > { %v1013_v44 = vadd.f32 %v1012_v38, %v1011_v37 }
 0x1fa   : > { %v845_v50 = vpop.permute.xlu1 %844  ;;  %v1020_v14 = vsel %vm996_vm2, %v992_v4, 0.0 }
 0x1fb   : > { %v1015_v55 = vadd.f32 %v1014_v43, %v1013_v44  ;;  %v865_v41 = vmul.f32 %v1212_v23, %v845_v50 }
 0x1fd   : > { %v1017_v0 = vadd.f32 %v1016_v52, %v1015_v55  ;;  %v881_v22 = vadd.f32 %v865_v41, %v768_v1 }
 0x1fe   : > { %v849_v5 = vpop.permute.xlu1 %848 }
 0x1ff   : > { %v1019_v6 = vadd.f32 %v1018_v3, %v1017_v0  ;;  %v866_v47 = vmul.f32 %v1213_v58, %v849_v5 }
 0x201   : > { %v882_v15 = vadd.f32 %v866_v47, %v769_v8  ;;  %v1021_v16 = vadd.f32 %v1020_v14, %v1019_v6 }
 0x203   : > { %v958_v19 = vpop.permute.xlu1 %957  ;;  %v995_v62 = vadd.f32 %v979_v20, %v882_v15  ;;  %v1023_v25 = vadd.f32 %v1022_v24, %v1021_v16 }
 0x204   : > { %v978_v17 = vmul.f32 %v1228_v12, %v958_v19 }
 0x205   : > { %v1026_v29 = vsel %vm996_vm2, %v995_v62, 0.0 }
 0x206   : > { %v994_v63 = vadd.f32 %v978_v17, %v881_v22 }
 0x208   : > { %v1024_v26 = vsel %vm996_vm2, %v994_v63, 0.0 }
 0x209   : > { %v1025_v27 = vadd.f32 %v1024_v26, %v1023_v25 }
 0x20b   : > { %v1027_v30 = vadd.f32 %v1026_v29, %v1025_v27 }
 0x20d   : > { %v1028_v32 = vrot.slane %v1027_v30, 4 }
 0x20f   : > { %v1029_v34 = vadd.f32 %v1028_v32, %v1027_v30 }
 0x211   : > { %v1030_v35 = vrot.slane %v1029_v34, 2 }
 0x213   : > { %v1031_v36 = vadd.f32 %v1030_v35, %v1029_v34 }
 0x215   : > { %v1032_v37 = vrot.slane %v1031_v36, 1 }
 0x217   : > { %v1033_v38 = vadd.f32 %v1032_v37, %v1031_v36 }
 0x219   : > { %v1035_v39 = vadd.f32 %v1034_v59, %v1033_v38 }
 0x21b   : > { %1037 = vst.msk [vmem:[%s251_s20] sm:$0x1] %vm1036_vm3, %v1035_v39 }
 0x21c   : > { %1396 = shalt.err (!%p1393_p3)
}
 0x21d   : > { %s1397_s14 = scalar_lea.hbm %s1057_s9, 16  ;;  %s1401_s17 = scalar_lea.hbm %s2071_s6, 32 }
 0x21e   : > { %p1398_p4 = scmp.ne.s32.totalorder %s1057_s9, %s1397_s14  ;;  %p1402_p9 = scmp.lt.s32.totalorder %s1057_s9, %s2071_s6 }
 0x21f   : > { %p1403_p10 = scmp.lt.s32.totalorder %s1401_s17, %s1397_s14 }
 0x220   : > { %p1399_p7 = pnand %p1398_p4, %p1523_p5 }
 0x221   : > { %p1404_p11 = por %p1403_p10, %p1402_p9 }
 0x222   : > { %p1400_p8 = pneg %p1399_p7 }
 0x224   : > { %p1405_p12 = pnand %p1404_p11, %p1400_p8 }
 0x226   : > { %1408 = shalt.err (!%p1405_p12)
}
 0x227   : > { %1285 = dma.vmem_to_hbm [thread:$0]  (%p1523_p5), %s1060_s26, 16, %s1057_s9, %s1044_s10  }
 0x228 PF: > { %p1291_p13 = scmp.ge.s32.totalorder %s1443_s24, 2  ;;  %s1079_s20 = sand.u32 1, %s1431_s21  }
 0x229   : > { %s1080_s28 = scalar_lea.sflag [#allocation3], %s1079_s20 }
 0x22a   : > { %p1288_p0 = pnand %p1291_p13, %p1527_p6 }
 0x22c   : > { %p1289_p1 = pneg %p1288_p0 }
 0x22e   : > { %1426 = dma.done.wait (%p1289_p1), %s1080_s28, 16  }
 0x22f   : > { %1428 = vsyncadd (%p1289_p1), %s1080_s28, 4294967280  ;;  %p17_p2 = scmp.ge.s32.totalorder %s1510_s27, 4   ;;  %s2074_s21 = smov %s1435_s22 }
 0x230   : > { %s2075_s22 = smov %s1439_s23  ;;  %s2076_s23 = smov %s1521_s30 }
 0x231   : > { %s2077_s24 = smov %s1510_s27  ;;  %19 = sbr.rel (!%p17_p2) target bundleno = 3 (0x3), region = 90 }
 0x236   :  { %1084 = vsyncpa [#allocation3], 1 }
 0x237   :  { %1086 = vsyncpa [#allocation3 + $0x1], 1 }

</bundles_post_ra>
